<compile_context>
chip_gen: v5e
topology: v5e:2x2
jax: 0.10.0
libtpu: 0.0.40
codegen_flags: <defaults>
</compile_context>

<pallas_src>
import functools

import jax
import jax.numpy as jnp
from jax.experimental import pallas as pl
from jax.experimental.pallas import tpu as pltpu


def _pick_tile(n, target, *, min_grid=1):
    """Largest multiple-of-128 divisor of n that is <= target and leaves at
    least `min_grid` grid steps; falls back to 128."""
    assert n % 128 == 0, "node count must be a multiple of 128 for this kernel"
    best = None
    t = 128
    limit = min(target, n)
    while t <= limit:
        if n % t == 0 and (n // t) >= min_grid:
            best = t
        t += 128
    return best if best is not None else 128


# ---------------------------------------------------------------------------
# Fused GCNConv(normalize=False) layer kernel:
#   Y = A @ (X @ W) + b   [+ relu | + log_softmax]
#   grid = (row tiles [parallel], adj-column K tiles [arbitrary, reduction last])
# ---------------------------------------------------------------------------
def gcn_layer_kernel(adj_ref, x_ref, w_ref, b_ref, out_ref, acc_ref, *,
                     apply_relu: bool, apply_log_softmax: bool):
    k = pl.program_id(1)

    @pl.when(k == 0)
    def _():
        acc_ref[...] = jnp.zeros_like(acc_ref)

    # int8 (0/1) adjacency tile -> bf16 right after the DMA (exact; VPU cast
    # hides under DMA/MXU). Halves the dominant HBM stream vs bf16 storage.
    adj = adj_ref[...].astype(jnp.bfloat16)

    # Fused feature transform for this K-slab: H_k = X_k @ W (bf16 MXU,
    # f32 accumulation). Eliminates the H HBM round trip of the 2-kernel design.
    h = jnp.dot(x_ref[...].astype(jnp.bfloat16), w_ref[...],
                preferred_element_type=jnp.float32).astype(jnp.bfloat16)

    # bf16 x bf16 -> f32 accumulation on the MXU.
    acc_ref[...] += jnp.dot(adj, h, preferred_element_type=jnp.float32)

    @pl.when(k == pl.num_programs(1) - 1)
    def _():
        y = acc_ref[...] + b_ref[...]
        if apply_relu:
            y = jnp.maximum(y, 0.0)
        if apply_log_softmax:
            # True (unpadded) output width -> no lane masking needed.
            m = jnp.max(y, axis=-1, keepdims=True)
            lse = jnp.log(jnp.sum(jnp.exp(y - m), axis=-1, keepdims=True))
            y = y - m - lse
        out_ref[...] = y.astype(out_ref.dtype)


def gcn_layer(adj_i8, x, w_bf16, b_f32, *, relu, log_softmax,
              tm_target=512, tk_target=512):
    """One fused GCNConv(normalize=False) layer: adj @ (x @ w) + b [+relu|+lsm]."""
    N = adj_i8.shape[0]
    Fin = x.shape[1]
    Fout = w_bf16.shape[1]

    # Keep >= 2 row tiles when possible so the "parallel" axis can shard across
    # both TensorCores on v7x; K tiles as large as divisibility allows.
    tm = _pick_tile(N, tm_target, min_grid=2)
    tk = _pick_tile(N, tk_target)
    assert N % tm == 0 and N % tk == 0

    out_dtype = jnp.bfloat16 if relu else jnp.float32
    out_bytes = jnp.dtype(out_dtype).itemsize
    x_bytes = x.dtype.itemsize

    kernel = functools.partial(gcn_layer_kernel, apply_relu=relu,
                               apply_log_softmax=log_softmax)

    return pl.pallas_call(
        kernel,
        out_shape=jax.ShapeDtypeStruct((N, Fout), out_dtype),
        grid=(N // tm, N // tk),                     # reduction (K) axis last
        in_specs=[
            pl.BlockSpec((tm, tk), lambda i, k: (i, k)),    # adj tile (int8 0/1)
            pl.BlockSpec((tk, Fin), lambda i, k: (k, 0)),   # X K-slab
            pl.BlockSpec((Fin, Fout), lambda i, k: (0, 0)), # W (resident, bf16)
            pl.BlockSpec((1, Fout), lambda i, k: (0, 0)),   # bias (resident)
        ],
        out_specs=pl.BlockSpec((tm, Fout), lambda i, k: (i, 0)),
        scratch_shapes=[pltpu.VMEM((tm, Fout), jnp.float32)],
        compiler_params=pltpu.CompilerParams(
            dimension_semantics=("parallel", "arbitrary"),
            # Usage here is only a few MiB; 48 MiB leaves headroom for larger
            # tile sweeps while staying safe on v7x's 64 MiB VMEM.
            vmem_limit_bytes=48 * 1024 * 1024),
        cost_estimate=pl.CostEstimate(
            flops=2 * N * N * Fout + 2 * (N // tm) * N * Fin * Fout,
            transcendentals=(N * Fout) if log_softmax else 0,
            bytes_accessed=(N * N * 1                       # int8 adjacency
                            + (N // tm) * N * Fin * x_bytes # X re-reads
                            + Fin * Fout * 2 + Fout * 4     # W + b
                            + N * Fout * out_bytes)),       # output writeback
    )(adj_i8, x, w_bf16, b_f32)


def gcn_forward(x, adj, weights, biases):
    """Full GCN inference forward. Dropout between layers is identity at
    inference (training=False) and therefore omitted."""
    # normalize=False -> adjacency entries are 0/1 -> exact in int8.
    # (If adj were gcn_norm'd, keep it f32 instead — int8/bf16 would round it.)
    adj_i8 = adj.astype(jnp.int8)
    h = x
    n_layers = len(weights)
    for l in range(n_layers):
        last = (l == n_layers - 1)
        h = gcn_layer(adj_i8, h, weights[l].astype(jnp.bfloat16), biases[l],
                      relu=not last, log_softmax=last)
    return h


def init_params(key, in_channels, hidden_channels, out_channels, num_layers):
    dims = [in_channels] + [hidden_channels] * (num_layers - 1) + [out_channels]
    weights, biases = [], []
    for l in range(num_layers):
        key, kw = jax.random.split(key)
        fan_in, fan_out = dims[l], dims[l + 1]
        scale = jnp.sqrt(6.0 / (fan_in + fan_out))  # glorot-uniform like PyG reset
        w = jax.random.uniform(kw, (fan_in, fan_out), jnp.float32, -scale, scale)
        b = jnp.zeros((1, fan_out), jnp.float32)    # GCNConv bias init: zeros
        weights.append(w)
        biases.append(b)
    return weights, biases


def gcn_reference(x, adj, weights, biases):
    """Pure-JAX reference matching the kernel's precision choices
    (bf16 X/W/adj operands, f32 accumulation, bf16 hidden activations)."""
    h = x
    n = len(weights)
    adj_bf = adj.astype(jnp.bfloat16)
    for l in range(n):
        t = jnp.dot(h.astype(jnp.bfloat16), weights[l].astype(jnp.bfloat16),
                    preferred_element_type=jnp.float32).astype(jnp.bfloat16)
        y = jnp.dot(adj_bf, t, preferred_element_type=jnp.float32) + biases[l]
        if l < n - 1:
            h = jnp.maximum(y, 0.0).astype(jnp.bfloat16)
        else:
            h = jax.nn.log_softmax(y, axis=-1)
    return h


if __name__ == "__main__":
    # Small but tile-aligned shapes: N=256 nodes, in=16, hidden=32, out=8, 3 layers.
    N, in_ch, hid_ch, out_ch, num_layers = 256, 16, 32, 8, 3

    key = jax.random.PRNGKey(0)
    key, kx, ka = jax.random.split(key, 3)

    x = jax.random.normal(kx, (N, in_ch), jnp.float32)
    # Synthetic dense 0/1 adjacency (stand-in for the SparseTensor adj_t).
    adj = (jax.random.uniform(ka, (N, N)) < 0.02).astype(jnp.float32)
    adj = jnp.maximum(adj, jnp.eye(N, dtype=jnp.float32))  # self loops (keep 0/1)

    weights, biases = init_params(key, in_ch, hid_ch, out_ch, num_layers)

    out = gcn_forward(x, adj, weights, biases)
    out = jax.block_until_ready(out)

    # Sanity / correctness checks.
    assert out.shape == (N, out_ch)
    assert bool(jnp.all(jnp.isfinite(out)))
    # log_softmax rows sum to ~1 in prob space
    assert bool(jnp.allclose(jnp.sum(jnp.exp(out), axis=-1), 1.0, atol=1e-3))
    # match the precision-equivalent pure-JAX reference
    ref = gcn_reference(x, adj, weights, biases)
    assert bool(jnp.allclose(out, ref, atol=1e-1, rtol=1e-1)), \
        float(jnp.max(jnp.abs(out - ref)))

    print("KERNEL_OK")
</pallas_src>

<mosaic_0001>
module attributes {stable_mosaic.version = 11 : i64} {
  func.func @gcn_layer_kernel(%arg0: i32, %arg1: i32, %arg2: memref<128x256xi8, #tpu.memory_space<vmem>>, %arg3: memref<256x16xf32, #tpu.memory_space<vmem>>, %arg4: memref<16x32xbf16, #tpu.memory_space<vmem>>, %arg5: memref<1x32xf32, #tpu.memory_space<vmem>>, %arg6: memref<128x32xbf16, #tpu.memory_space<vmem>>, %arg7: memref<128x32xf32, #tpu.memory_space<vmem>>) attributes {dimension_semantics = [#tpu.dimension_semantics<parallel>, #tpu.dimension_semantics<arbitrary>], iteration_bounds = array<i64: 2, 1>, scalar_prefetch = 0 : i64, scratch_operands = 1 : i64, tpu.core_type = #tpu.core_type<tc>, window_params = [{transform_indices = @transform_0, window_bounds = array<i64: 128, 256>}, {transform_indices = @transform_1, window_bounds = array<i64: 256, 16>}, {pipeline_mode = #tpu.pipeline_mode<synchronous>, transform_indices = @transform_2, window_bounds = array<i64: 16, 32>}, {pipeline_mode = #tpu.pipeline_mode<synchronous>, transform_indices = @transform_3, window_bounds = array<i64: 1, 32>}, {transform_indices = @transform_4, window_bounds = array<i64: 128, 32>}]} {
    %c0_i32 = arith.constant 0 : i32
    %0 = arith.cmpi eq, %arg1, %c0_i32 : i32
    %1 = arith.extui %0 : i1 to i32
    %c0_i32_0 = arith.constant 0 : i32
    %2 = arith.cmpi ne, %1, %c0_i32_0 : i32
    scf.if %2 {
      %cst_13 = arith.constant 0.000000e+00 : f32
      %17 = vector.broadcast %cst_13 : f32 to vector<128x32xf32>
      %c0_14 = arith.constant 0 : index
      %c0_15 = arith.constant 0 : index
      %18 = vector.load %arg7[%c0_14, %c0_15] : memref<128x32xf32, #tpu.memory_space<vmem>>, vector<128x32xf32>
      tpu.vector_store %arg7[%c0_14, %c0_15], %17 {strides = array<i32>} : memref<128x32xf32, #tpu.memory_space<vmem>>, vector<128x32xf32>,
    } else {
    }
    %c0 = arith.constant 0 : index
    %c0_1 = arith.constant 0 : index
    %3 = vector.load %arg2[%c0, %c0_1] : memref<128x256xi8, #tpu.memory_space<vmem>>, vector<128x256xi8>
    %4 = arith.sitofp %3 : vector<128x256xi8> to vector<128x256xbf16>
    %c0_2 = arith.constant 0 : index
    %c0_3 = arith.constant 0 : index
    %5 = vector.load %arg3[%c0_2, %c0_3] : memref<256x16xf32, #tpu.memory_space<vmem>>, vector<256x16xf32>
    %6 = arith.truncf %5 : vector<256x16xf32> to vector<256x16xbf16>
    %c0_4 = arith.constant 0 : index
    %c0_5 = arith.constant 0 : index
    %7 = vector.load %arg4[%c0_4, %c0_5] : memref<16x32xbf16, #tpu.memory_space<vmem>>, vector<16x32xbf16>
    %cst = arith.constant dense<0.000000e+00> : vector<256x32xf32>
    %8 = tpu.matmul %6, %7, %cst {dimension_numbers = #tpu.dot_dimension_numbers<[1], [0], [0], [1], [0, 0, 1, 1], [], []>} : vector<256x16xbf16>, vector<16x32xbf16>, vector<256x32xf32> -> vector<256x32xf32>
    %9 = arith.truncf %8 : vector<256x32xf32> to vector<256x32xbf16>
    %c0_6 = arith.constant 0 : index
    %c0_7 = arith.constant 0 : index
    %10 = vector.load %arg7[%c0_6, %c0_7] : memref<128x32xf32, #tpu.memory_space<vmem>>, vector<128x32xf32>
    %cst_8 = arith.constant dense<0.000000e+00> : vector<128x32xf32>
    %11 = tpu.matmul %4, %9, %cst_8 {dimension_numbers = #tpu.dot_dimension_numbers<[1], [0], [0], [1], [0, 0, 1, 1], [], []>} : vector<128x256xbf16>, vector<256x32xbf16>, vector<128x32xf32> -> vector<128x32xf32>
    %12 = arith.addf %10, %11 : vector<128x32xf32>
    %c0_9 = arith.constant 0 : index
    %c0_10 = arith.constant 0 : index
    %13 = vector.load %arg7[%c0_9, %c0_10] : memref<128x32xf32, #tpu.memory_space<vmem>>, vector<128x32xf32>
    tpu.vector_store %arg7[%c0_9, %c0_10], %12 {strides = array<i32>} : memref<128x32xf32, #tpu.memory_space<vmem>>, vector<128x32xf32>,
    %c0_i32_11 = arith.constant 0 : i32
    %14 = arith.cmpi eq, %arg1, %c0_i32_11 : i32
    %15 = arith.extui %14 : i1 to i32
    %c0_i32_12 = arith.constant 0 : i32
    %16 = arith.cmpi ne, %15, %c0_i32_12 : i32
    scf.if %16 {
      %c0_13 = arith.constant 0 : index
      %c0_14 = arith.constant 0 : index
      %17 = vector.load %arg7[%c0_13, %c0_14] : memref<128x32xf32, #tpu.memory_space<vmem>>, vector<128x32xf32>
      %c0_15 = arith.constant 0 : index
      %c0_16 = arith.constant 0 : index
      %18 = vector.load %arg5[%c0_15, %c0_16] : memref<1x32xf32, #tpu.memory_space<vmem>>, vector<1x32xf32>
      %19 = vector.broadcast %18 : vector<1x32xf32> to vector<128x32xf32>
      %20 = arith.addf %17, %19 : vector<128x32xf32>
      %cst_17 = arith.constant 0.000000e+00 : f32
      %21 = vector.broadcast %cst_17 : f32 to vector<128x32xf32>
      %22 = arith.maximumf %20, %21 : vector<128x32xf32>
      %23 = arith.truncf %22 : vector<128x32xf32> to vector<128x32xbf16>
      %c0_18 = arith.constant 0 : index
      %c0_19 = arith.constant 0 : index
      %24 = vector.load %arg6[%c0_18, %c0_19] : memref<128x32xbf16, #tpu.memory_space<vmem>>, vector<128x32xbf16>
      tpu.vector_store %arg6[%c0_18, %c0_19], %23 {strides = array<i32>} : memref<128x32xbf16, #tpu.memory_space<vmem>>, vector<128x32xbf16>,
    } else {
    }
    return
  }
  func.func @transform_0(%arg0: i32, %arg1: i32) -> (i32, i32) {
    %c0_i32 = arith.constant 0 : i32
    return %arg0, %arg1 : i32, i32
  }
  func.func @transform_1(%arg0: i32, %arg1: i32) -> (i32, i32) {
    %c0_i32 = arith.constant 0 : i32
    %c0_i32_0 = arith.constant 0 : i32
    return %arg1, %c0_i32 : i32, i32
  }
  func.func @transform_2(%arg0: i32, %arg1: i32) -> (i32, i32) {
    %c0_i32 = arith.constant 0 : i32
    %c0_i32_0 = arith.constant 0 : i32
    %c0_i32_1 = arith.constant 0 : i32
    return %c0_i32, %c0_i32_0 : i32, i32
  }
  func.func @transform_3(%arg0: i32, %arg1: i32) -> (i32, i32) {
    %c0_i32 = arith.constant 0 : i32
    %c0_i32_0 = arith.constant 0 : i32
    %c0_i32_1 = arith.constant 0 : i32
    return %c0_i32, %c0_i32_0 : i32, i32
  }
  func.func @transform_4(%arg0: i32, %arg1: i32) -> (i32, i32) {
    %c0_i32 = arith.constant 0 : i32
    %c0_i32_0 = arith.constant 0 : i32
    return %arg0, %c0_i32 : i32, i32
  }
}

</mosaic_0001>

<bundles_post_ra>
// kernel: tpu_custom_call.1
= control target key start
LH: loop header
LB: loop body
LE: loop exit
PB: predicated region body
PF: predicated region fallthrough
CT: control target
= control target key end

     0   :  { %s1007_s15 = smov 0   ;;  %s1009_s16 = smov 0   ;;  %s1283_s0 = inlined_call_operand.vmem [shape: s8[256,256], index: 0, kind: input, shape index: {}]   ;;  %s1284_s1 = inlined_call_operand.vmem [shape: f32[256,16], index: 1, kind: input, shape index: {}]   ;;  %s1285_s2 = inlined_call_operand.vmem [shape: bf16[16,32], index: 2, kind: input, shape index: {}]   ;;  %s1286_s3 = inlined_call_operand.vmem [shape: f32[1,32], index: 3, kind: input, shape index: {}]   ;;  %s1287_s4 = inlined_call_operand.vmem [shape: bf16[256,32], index: 4, kind: output, shape index: {}]  }
   0x1   :  { %s1011_s17 = smov 0  }
   0x2 LB: > { %s26_s18 = sadd.s32 1, %s975_s16  ;;  %p900_p0 = scmp.ge.s32.totalorder %s979_s17, 1  ;;  %s979_s17 = sphi %s1011_s17, %s14_s17   ;;  %s975_s16 = sphi %s1009_s16, %s1289_s16   ;;  %s971_s15 = sphi %s1007_s15, %s1288_s15  }
   0x3   : > { %p28_p1 = scmp.ge.s32.totalorder %s26_s18, 2  ;;  %p194_p2 = scmp.lt.s32.totalorder %s979_s17, 3 }
   0x5   : > { %s1291_s18 = smov (%p28_p1, %s26_s18), 0  ;;  %p195_p3 = pnand %p900_p0, %p194_p2 }
   0x6   : > { %s901_s19 = sshll.u32 (!%p195_p3), %s971_s15, 2  ;;  %s904_s24 = sshll.u32 (!%p195_p3), %s971_s15, 4 }
   0x7   : > { %198 = sbr.rel (%p195_p3) target bundleno = 560 (0x230), region = 36  ;;  %p232_p4 = scmp.lt.s32.totalorder (!%p195_p3), %s901_s19, 7 }
   0x8   : > { %p249_p5 = scmp.lt.s32.totalorder (!%p195_p3), %s904_s24, 31 }
   0xc   : > { %v929_v0 = vld [vmem:[%s1285_s2] sm:$0xff]  ;;  %v365_v2 = vld [vmem:[%s1284_s1 + $0x8] sm:$0xff]  ;;  %v382_v4 = vld [vmem:[%s1284_s1 + $0x90] sm:$0xff]  ;;  %vm420_vm0 = vcmask 130048   ;;  %s1293_s19 = smov (!%p232_p4, %s901_s19), 7  ;;  %vm259_vm1 = vcmask 261120  }
   0xd   : > { %v364_v1 = vld [vmem:[%s1284_s1] sm:$0xff]  ;;  %v383_v5 = vld [vmem:[%s1284_s1 + $0x98] sm:$0xff]  ;;  %476 = vmatpush.bf16.msra.mxu0 %v929_v0  ;;  %930 = vmatpush.bf16.msra.mxu3 %v929_v0  ;;  %v366_v7 = vld [vmem:[%s1284_s1 + $0x10] sm:$0xff]  ;;  %s928_s20 = sshll.u32 %s1293_s19, 4  ;;  %s1295_s24 = smov (!%p249_p5, %s904_s24), 31  ;;  %vm792_vm2 = vcmask 257024  }
   0xe   : > { %v396_v3 = vpack.c.bf16 %v365_v2, %v364_v1  ;;  %v405_v6 = vpack.c.bf16 %v383_v5, %v382_v4  ;;  %v367_v8 = vld [vmem:[%s1284_s1 + $0x18] sm:$0xff]  ;;  %v384_v9 = vld [vmem:[%s1284_s1 + $0xa0] sm:$0xff]  ;;  %v385_v10 = vld [vmem:[%s1284_s1 + $0xa8] sm:$0xff]  ;;  %s1167_s23 = scalar_lea.vmem %s1283_s0, %s928_s20  ;;  %s905_s27 = sshll.u32 %s1295_s24, 2 }
   0xf   : > { %v397_v11 = vpack.c.bf16 %v367_v8, %v366_v7  ;;  %v406_v12 = vpack.c.bf16 %v385_v10, %v384_v9  ;;  %v368_v13 = vld [vmem:[%s1284_s1 + $0x20] sm:$0xff]  ;;  %v369_v14 = vld [vmem:[%s1284_s1 + $0x28] sm:$0xff]  ;;  %v386_v15 = vld [vmem:[%s1284_s1 + $0xb0] sm:$0xff]  ;;  %s1211_s29 = scalar_lea.vmem %s1287_s4, %s905_s27 }
  0x10   : > { %910 = vmatmul.msk.bf16.vlgmr.msra.gmra.mxu0 %vm420_vm0, %v396_v3  ;;  %919 = vmatmul.msk.bf16.vlgmr.msra.gmra.mxu3 %vm420_vm0, %v405_v6  ;;  %v387_v16 = vld [vmem:[%s1284_s1 + $0xb8] sm:$0xff]  ;;  %v398_v17 = vpack.c.bf16 %v369_v14, %v368_v13  ;;  %v370_v19 = vld [vmem:[%s1284_s1 + $0x30] sm:$0xff]  ;;  %v388_v21 = vld [vmem:[%s1284_s1 + $0xc0] sm:$0xff] }
  0x11   : > { %v407_v18 = vpack.c.bf16 %v387_v16, %v386_v15  ;;  %v371_v20 = vld [vmem:[%s1284_s1 + $0x38] sm:$0xff]  ;;  %v389_v22 = vld [vmem:[%s1284_s1 + $0xc8] sm:$0xff]  ;;  %v372_v25 = vld [vmem:[%s1284_s1 + $0x40] sm:$0xff] }
  0x12   : > { %v399_v23 = vpack.c.bf16 %v371_v20, %v370_v19  ;;  %v408_v24 = vpack.c.bf16 %v389_v22, %v388_v21  ;;  %v373_v26 = vld [vmem:[%s1284_s1 + $0x48] sm:$0xff]  ;;  %v390_v27 = vld [vmem:[%s1284_s1 + $0xd0] sm:$0xff]  ;;  %v391_v28 = vld [vmem:[%s1284_s1 + $0xd8] sm:$0xff] }
  0x13   : > { %v400_v29 = vpack.c.bf16 %v373_v26, %v372_v25  ;;  %v409_v30 = vpack.c.bf16 %v391_v28, %v390_v27  ;;  %v374_v31 = vld [vmem:[%s1284_s1 + $0x50] sm:$0xff]  ;;  %v375_v32 = vld [vmem:[%s1284_s1 + $0x58] sm:$0xff]  ;;  %v392_v33 = vld [vmem:[%s1284_s1 + $0xe0] sm:$0xff] }
  0x14   : > { %v393_v34 = vld [vmem:[%s1284_s1 + $0xe8] sm:$0xff]  ;;  %v401_v35 = vpack.c.bf16 %v375_v32, %v374_v31  ;;  %v376_v37 = vld [vmem:[%s1284_s1 + $0x60] sm:$0xff]  ;;  %v394_v39 = vld [vmem:[%s1284_s1 + $0xf0] sm:$0xff] }
  0x15   : > { %v410_v36 = vpack.c.bf16 %v393_v34, %v392_v33  ;;  %v377_v38 = vld [vmem:[%s1284_s1 + $0x68] sm:$0xff]  ;;  %v395_v40 = vld [vmem:[%s1284_s1 + $0xf8] sm:$0xff]  ;;  %v378_v43 = vld [vmem:[%s1284_s1 + $0x70] sm:$0xff] }
  0x16   : > { %v402_v41 = vpack.c.bf16 %v377_v38, %v376_v37  ;;  %v411_v42 = vpack.c.bf16 %v395_v40, %v394_v39  ;;  %v379_v44 = vld [vmem:[%s1284_s1 + $0x78] sm:$0xff]  ;;  %v380_v46 = vld [vmem:[%s1284_s1 + $0x80] sm:$0xff]  ;;  %v381_v47 = vld [vmem:[%s1284_s1 + $0x88] sm:$0xff] }
  0x17   : > { %v403_v45 = vpack.c.bf16 %v379_v44, %v378_v43  ;;  %v404_v48 = vpack.c.bf16 %v381_v47, %v380_v46  ;;  %v276_v38 = vld [vmem:[%s1167_s23] sm:$0xff] }
  0x18   : > { %v284_v40 = vunpack.c.0.s8 %v276_v38 }
  0x20   : > { %911 = vmatmul.msk.bf16.gmra.mxu0 %vm420_vm0, %v397_v11  ;;  %920 = vmatmul.msk.bf16.gmra.mxu3 %vm420_vm0, %v406_v12 }
  0x30   : > { %912 = vmatmul.msk.bf16.gmra.mxu0 %vm420_vm0, %v398_v17  ;;  %921 = vmatmul.msk.bf16.gmra.mxu3 %vm420_vm0, %v407_v18 }
  0x40   : > { %913 = vmatmul.msk.bf16.gmra.mxu0 %vm420_vm0, %v399_v23  ;;  %922 = vmatmul.msk.bf16.gmra.mxu3 %vm420_vm0, %v408_v24 }
  0x50   : > { %914 = vmatmul.msk.bf16.gmra.mxu0 %vm420_vm0, %v400_v29  ;;  %923 = vmatmul.msk.bf16.gmra.mxu3 %vm420_vm0, %v409_v30  ;;  %v277_v30 = vld [vmem:[%s1167_s23 + $0x8] sm:$0xff] }
  0x51   : > { %v285_v31 = vunpack.c.0.s8 %v277_v30  ;;  %v287_v32 = vunpack.c.1.s8 %v277_v30  ;;  %v289_v44 = vunpack.c.2.s8 %v277_v30 }
  0x53   : > { %v321_v47 = vcvt.s32.f32 %v289_v44 }
  0x60   : > { %915 = vmatmul.msk.bf16.gmra.mxu0 %vm420_vm0, %v401_v35  ;;  %924 = vmatmul.msk.bf16.gmra.mxu3 %vm420_vm0, %v410_v36  ;;  %v317_v35 = vcvt.s32.f32 %v285_v31  ;;  %v319_v36 = vcvt.s32.f32 %v287_v32  ;;  %v283_v32 = vld [vmem:[%s1167_s23 + $0x38] sm:$0xff] }
  0x62   : > { %v349_v39 = vpack.c.bf16 %v319_v36, %v317_v35  ;;  %v309_v35 = vunpack.c.0.s8 %v283_v32  ;;  %v311_v36 = vunpack.c.1.s8 %v283_v32 }
  0x70   : > { %916 = vmatmul.msk.bf16.gmra.mxu0 %vm420_vm0, %v402_v41  ;;  %925 = vmatmul.msk.bf16.gmra.mxu3 %vm420_vm0, %v411_v42  ;;  %v286_v41 = vunpack.c.1.s8 %v276_v38  ;;  %v316_v42 = vcvt.s32.f32 %v284_v40  ;;  %v282_v40 = vld [vmem:[%s1167_s23 + $0x30] sm:$0xff] }
  0x72   : > { %v318_v43 = vcvt.s32.f32 %v286_v41 }
  0x74   : > { %v348_v46 = vpack.c.bf16 %v318_v43, %v316_v42  ;;  %v308_v42 = vunpack.c.0.s8 %v282_v40  ;;  %v310_v43 = vunpack.c.1.s8 %v282_v40 }
  0x76   : > { %v340_v44 = vcvt.s32.f32 %v308_v42 }
  0x80   : > { %917 = vmatmul.msk.bf16.gmra.mxu0 %vm420_vm0, %v403_v45  ;;  %v291_v45 = vunpack.c.3.s8 %v277_v30 }
  0x8d   : > { %v1141_v49 = vpop.f32.mrf.mxu0 }
  0x90   : > { %918 = vmatmul.msk.bf16.gmra.mxu0 %vm420_vm0, %v404_v48  ;;  %v323_v48 = vcvt.s32.f32 %v291_v45  ;;  %v342_v45 = vcvt.s32.f32 %v310_v43 }
  0x93   : > { %v1144_v50 = vpop.f32.mrf.mxu3 }
  0x95   : > { %v1146_v51 = vpop.f32.mrf.mxu0 }
  0x96   : > { %v558_v52 = vpack.c.bf16 %v1146_v51, %v1141_v49 }
  0x9b   : > { %v1150_v53 = vpop.f32.mrf.mxu3 }
  0x9c   : > { %v567_v54 = vpack.c.bf16 %v1150_v53, %v1144_v50  ;;  %v351_v50 = vpack.c.bf16 %v323_v48, %v321_v47  ;;  %v288_v53 = vunpack.c.2.s8 %v276_v38  ;;  %v313_v47 = vunpack.c.2.s8 %v283_v32 }
  0x9d   : > { %v1154_v55 = vpop.f32.mrf.mxu0  ;;  %v315_v48 = vunpack.c.3.s8 %v283_v32 }
  0xa3   : > { %v528_v56 = vpop.f32.mrf.mxu3 }
  0xa5   : > { %v1156_v57 = vpop.f32.mrf.mxu0 }
  0xa6   : > { %v559_v58 = vpack.c.bf16 %v1156_v57, %v1154_v55 }
  0xab   : > { %v530_v59 = vpop.f32.mrf.mxu3 }
  0xac   : > { %v568_v60 = vpack.c.bf16 %v530_v59, %v528_v56  ;;  %v279_v56 = vld [vmem:[%s1167_s23 + $0x18] sm:$0xff]  ;;  %v320_v59 = vcvt.s32.f32 %v288_v53  ;;  %v345_v53 = vcvt.s32.f32 %v313_v47 }
  0xad   : > { %v1160_v61 = vpop.f32.mrf.mxu0  ;;  %v293_v55 = vunpack.c.0.s8 %v279_v56  ;;  %v295_v57 = vunpack.c.1.s8 %v279_v56 }
  0xb3   : > { %v533_v62 = vpop.f32.mrf.mxu3 }
  0xb5   : > { %v490_v63 = vpop.f32.mrf.mxu0 }
  0xb6   : > { %v560_v0 = vpack.c.bf16 %v490_v63, %v1160_v61  ;;  %v325_v61 = vcvt.s32.f32 %v293_v55  ;;  %v278_v63 = vld [vmem:[%s1167_s23 + $0x10] sm:$0xff] }
  0xb7   : > { %v292_v51 = vunpack.c.0.s8 %v278_v63 }
  0xbb   : > { %v535_v1 = vpop.f32.mrf.mxu3 }
  0xbc   : > { %v569_v2 = vpack.c.bf16 %v535_v1, %v533_v62  ;;  %v327_v62 = vcvt.s32.f32 %v295_v57 }
  0xbd   : > { %v493_v3 = vpop.f32.mrf.mxu0 }
  0xbe   : > { %v353_v49 = vpack.c.bf16 %v327_v62, %v325_v61 }
  0xc3   : > { %v538_v4 = vpop.f32.mrf.mxu3 }
  0xc5   : > { %v495_v5 = vpop.f32.mrf.mxu0 }
  0xc6   : > { %v561_v6 = vpack.c.bf16 %v495_v5, %v493_v3  ;;  %v299_v3 = vunpack.c.3.s8 %v279_v56 }
  0xcb   : > { %v540_v7 = vpop.f32.mrf.mxu3 }
  0xcc   : > { %v570_v26 = vpack.c.bf16 %v540_v7, %v538_v4 }
  0xcd   : > { %v498_v8 = vpop.f32.mrf.mxu0 }
  0xd3   : > { %v543_v9 = vpop.f32.mrf.mxu3 }
  0xd5   : > { %v500_v10 = vpop.f32.mrf.mxu0 }
  0xd6   : > { %v562_v33 = vpack.c.bf16 %v500_v10, %v498_v8  ;;  %v296_v8 = vunpack.c.2.s8 %v278_v63  ;;  %v281_v10 = vld [vmem:[%s1167_s23 + $0x28] sm:$0xff] }
  0xdb   : > { %v545_v11 = vpop.f32.mrf.mxu3 }
  0xdc   : > { %v571_v23 = vpack.c.bf16 %v545_v11, %v543_v9  ;;  %v298_v9 = vunpack.c.3.s8 %v278_v63  ;;  %v328_v11 = vcvt.s32.f32 %v296_v8 }
  0xdd   : > { %v503_v12 = vpop.f32.mrf.mxu0 }
  0xe3   : > { %v548_v13 = vpop.f32.mrf.mxu3 }
  0xe5   : > { %v505_v14 = vpop.f32.mrf.mxu0 }
  0xe6   : > { %v563_v29 = vpack.c.bf16 %v505_v14, %v503_v12  ;;  %v330_v12 = vcvt.s32.f32 %v298_v9  ;;  %v303_v14 = vunpack.c.1.s8 %v281_v10 }
  0xeb   : > { %v550_v15 = vpop.f32.mrf.mxu3 }
  0xec   : > { %v572_v22 = vpack.c.bf16 %v550_v15, %v548_v13  ;;  %v301_v13 = vunpack.c.0.s8 %v281_v10  ;;  %v354_v15 = vpack.c.bf16 %v330_v12, %v328_v11 }
  0xed   : > { %v508_v16 = vpop.f32.mrf.mxu0 }
  0xf3   : > { %v553_v17 = vpop.f32.mrf.mxu3 }
  0xf5   : > { %v510_v18 = vpop.f32.mrf.mxu0 }
  0xf6   : > { %v564_v27 = vpack.c.bf16 %v510_v18, %v508_v16  ;;  %v333_v16 = vcvt.s32.f32 %v301_v13  ;;  %v280_v18 = vld [vmem:[%s1167_s23 + $0x20] sm:$0xff] }
  0xf7   : > { %v304_v30 = vunpack.c.2.s8 %v280_v18  ;;  %v306_v31 = vunpack.c.3.s8 %v280_v18 }
  0xfb   : > { %v555_v19 = vpop.f32.mrf.mxu3 }
  0xfc   : > { %v573_v20 = vpack.c.bf16 %v555_v19, %v553_v17  ;;  %v335_v17 = vcvt.s32.f32 %v303_v14 }
  0xfd   : > { %v513_v21 = vpop.f32.mrf.mxu0 }
  0xfe   : > { %639 = vmatpush.bf16.msra.mxu2 %v573_v20  ;;  %v357_v19 = vpack.c.bf16 %v335_v17, %v333_v16  ;;  %v300_v20 = vunpack.c.0.s8 %v280_v18 }
 0x102   : > { %640 = vmatpush.bf16.msra.mxu2 %v572_v22  ;;  %v332_v22 = vcvt.s32.f32 %v300_v20 }
 0x105   : > { %v515_v24 = vpop.f32.mrf.mxu0 }
 0x106   : > { %641 = vmatpush.bf16.msra.mxu2 %v571_v23  ;;  %v565_v25 = vpack.c.bf16 %v515_v24, %v513_v21  ;;  %v302_v21 = vunpack.c.1.s8 %v280_v18  ;;  %v305_v24 = vunpack.c.2.s8 %v281_v10 }
 0x108   : > { %590 = vmatpush.bf16.msra.mxu1 %v565_v25  ;;  %v334_v23 = vcvt.s32.f32 %v302_v21  ;;  %v307_v25 = vunpack.c.3.s8 %v281_v10 }
 0x10a   : > { %642 = vmatpush.bf16.msra.mxu2 %v570_v26  ;;  %v356_v26 = vpack.c.bf16 %v334_v23, %v332_v22 }
 0x10c   : > { %591 = vmatpush.bf16.msra.mxu1 %v564_v27  ;;  %v337_v27 = vcvt.s32.f32 %v305_v24 }
 0x10d   : > { %v518_v28 = vpop.f32.mrf.mxu0 }
 0x10e   : > { %643 = vmatpush.bf16.msra.mxu2 %v569_v2  ;;  %v297_v2 = vunpack.c.2.s8 %v279_v56 }
 0x110   : > { %592 = vmatpush.bf16.msra.mxu1 %v563_v29  ;;  %v329_v5 = vcvt.s32.f32 %v297_v2  ;;  %v1204_v2 = vld [vmem:[%s1286_s3] ss:$0 sm:$0xff] }
 0x112   : > { %644 = vmatpush.bf16.msra.mxu2 %v568_v60 }
 0x114   : > { %593 = vmatpush.bf16.msra.mxu1 %v562_v33  ;;  %v336_v33 = vcvt.s32.f32 %v304_v30 }
 0x115   : > { %v520_v34 = vpop.f32.mrf.mxu0 }
 0x116   : > { %645 = vmatpush.bf16.msra.mxu2 %v567_v54  ;;  %v566_v37 = vpack.c.bf16 %v520_v34, %v518_v28  ;;  %v290_v54 = vunpack.c.3.s8 %v276_v38  ;;  %v339_v28 = vcvt.s32.f32 %v307_v25  ;;  %v338_v34 = vcvt.s32.f32 %v306_v31 }
 0x117   : > { %v341_v38 = vcvt.s32.f32 %v309_v35 }
 0x118   : > { %594 = vmatpush.bf16.msra.mxu1 %v561_v6  ;;  %v322_v60 = vcvt.s32.f32 %v290_v54  ;;  %v331_v6 = vcvt.s32.f32 %v299_v3  ;;  %v359_v29 = vpack.c.bf16 %v339_v28, %v337_v27  ;;  %v347_v54 = vcvt.s32.f32 %v315_v48 }
 0x11a   : > { %646 = vmatpush.bf16.msra.mxu2 %v566_v37  ;;  %v355_v7 = vpack.c.bf16 %v331_v6, %v329_v5  ;;  %v358_v37 = vpack.c.bf16 %v338_v34, %v336_v33  ;;  %v363_v56 = vpack.c.bf16 %v347_v54, %v345_v53 }
 0x11c   : > { %595 = vmatpush.bf16.msra.mxu1 %v560_v0  ;;  %v324_v0 = vcvt.s32.f32 %v292_v51 }
 0x11d   : > { %647 = vmatmul.bf16.vlgmr.msra.gmra.mxu2 %v349_v39  ;;  %v343_v39 = vcvt.s32.f32 %v311_v36 }
 0x11f   : > { %v361_v41 = vpack.c.bf16 %v343_v39, %v341_v38 }
 0x120   : > { %596 = vmatpush.bf16.msra.mxu1 %v559_v58  ;;  %v350_v58 = vpack.c.bf16 %v322_v60, %v320_v59  ;;  %v312_v59 = vunpack.c.2.s8 %v282_v40  ;;  %v314_v60 = vunpack.c.3.s8 %v282_v40 }
 0x122   : > { %v344_v55 = vcvt.s32.f32 %v312_v59  ;;  %v346_v57 = vcvt.s32.f32 %v314_v60 }
 0x124   : > { %597 = vmatpush.bf16.msra.mxu1 %v558_v52  ;;  %v294_v52 = vunpack.c.1.s8 %v278_v63 }
 0x126   : > { %v326_v1 = vcvt.s32.f32 %v294_v52 }
 0x127   : > { %598 = vmatmul.bf16.vlgmr.msra.gmra.mxu1 %v348_v46  ;;  %v981_v46 = vmov 0.0  }
 0x128   : > { %v352_v4 = vpack.c.bf16 %v326_v1, %v324_v0  ;;  %260 = vst.msk [vmem:[#allocation2] sm:$0xff] %vm259_vm1, %v981_v46 }
 0x129   : > { %261 = vst.msk [vmem:[#allocation2 + $0x8] sm:$0xff] %vm259_vm1, %v981_v46 }
 0x12a   : > { %262 = vst.msk [vmem:[#allocation2 + $0x10] sm:$0xff] %vm259_vm1, %v981_v46 }
 0x12b   : > { %263 = vst.msk [vmem:[#allocation2 + $0x18] sm:$0xff] %vm259_vm1, %v981_v46 }
 0x12c   : > { %264 = vst.msk [vmem:[#allocation2 + $0x20] sm:$0xff] %vm259_vm1, %v981_v46 }
 0x12d   : > { %652 = vmatmul.bf16.gmra.mxu2 %v351_v50  ;;  %v360_v50 = vpack.c.bf16 %v342_v45, %v340_v44  ;;  %265 = vst.msk [vmem:[#allocation2 + $0x28] sm:$0xff] %vm259_vm1, %v981_v46 }
 0x12e   : > { %266 = vst.msk [vmem:[#allocation2 + $0x30] sm:$0xff] %vm259_vm1, %v981_v46 }
 0x12f   : > { %267 = vst.msk [vmem:[#allocation2 + $0x38] sm:$0xff] %vm259_vm1, %v981_v46  ;;  %v574_v62 = vld [vmem:[#allocation2] sm:$0xff] }
 0x130   : > { %268 = vst.msk [vmem:[#allocation2 + $0x40] sm:$0xff] %vm259_vm1, %v981_v46  ;;  %v575_v0 = vld [vmem:[#allocation2 + $0x8] sm:$0xff] }
 0x131   : > { %269 = vst.msk [vmem:[#allocation2 + $0x48] sm:$0xff] %vm259_vm1, %v981_v46  ;;  %v576_v9 = vld [vmem:[#allocation2 + $0x10] sm:$0xff] }
 0x132   : > { %270 = vst.msk [vmem:[#allocation2 + $0x50] sm:$0xff] %vm259_vm1, %v981_v46  ;;  %v577_v18 = vld [vmem:[#allocation2 + $0x18] sm:$0xff] }
 0x133   : > { %271 = vst.msk [vmem:[#allocation2 + $0x58] sm:$0xff] %vm259_vm1, %v981_v46  ;;  %v578_v27 = vld [vmem:[#allocation2 + $0x20] sm:$0xff] }
 0x134   : > { %272 = vst.msk [vmem:[#allocation2 + $0x60] sm:$0xff] %vm259_vm1, %v981_v46  ;;  %v579_v36 = vld [vmem:[#allocation2 + $0x28] sm:$0xff] }
 0x135   : > { %273 = vst.msk [vmem:[#allocation2 + $0x68] sm:$0xff] %vm259_vm1, %v981_v46  ;;  %v580_v45 = vld [vmem:[#allocation2 + $0x30] sm:$0xff] }
 0x136   : > { %274 = vst.msk [vmem:[#allocation2 + $0x70] sm:$0xff] %vm259_vm1, %v981_v46  ;;  %v581_v60 = vld [vmem:[#allocation2 + $0x38] sm:$0xff] }
 0x137   : > { %603 = vmatmul.bf16.gmra.mxu1 %v350_v58  ;;  %275 = vst.msk [vmem:[#allocation2 + $0x78] sm:$0xff] %vm259_vm1, %v981_v46  ;;  %v362_v58 = vpack.c.bf16 %v346_v57, %v344_v55 }
 0x13d   : > { %657 = vmatmul.bf16.gmra.mxu2 %v353_v49 }
 0x147   : > { %608 = vmatmul.bf16.gmra.mxu1 %v352_v4 }
 0x14d   : > { %662 = vmatmul.bf16.gmra.mxu2 %v355_v7 }
 0x157   : > { %613 = vmatmul.bf16.gmra.mxu1 %v354_v15 }
 0x15d   : > { %667 = vmatmul.bf16.gmra.mxu2 %v357_v19 }
 0x167   : > { %618 = vmatmul.bf16.gmra.mxu1 %v356_v26 }
 0x16d   : > { %672 = vmatmul.bf16.gmra.mxu2 %v359_v29 }
 0x177   : > { %623 = vmatmul.bf16.gmra.mxu1 %v358_v37 }
 0x17d   : > { %677 = vmatmul.bf16.gmra.mxu2 %v361_v41 }
 0x187   : > { %628 = vmatmul.bf16.gmra.mxu1 %v360_v50 }
 0x18d   : > { %682 = vmatmul.bf16.gmra.mxu2 %v363_v56 }
 0x197   : > { %633 = vmatmul.bf16.gmra.mxu1 %v362_v58 }
 0x1a0   : > { %v648_v61 = vpop.f32.mrf.mxu2 }
 0x1a4   : > { %v599_v63 = vpop.f32.mrf.mxu1 }
 0x1a5   : > { %v649_v49 = vadd.f32 %v648_v61, %v599_v63 }
 0x1a7   : > { %v688_v51 = vadd.f32 %v649_v49, %v574_v62 }
 0x1a8   : > { %v650_v52 = vpop.f32.mrf.mxu2 }
 0x1a9   : > { %705 = vst.msk [vmem:[#allocation2] sm:$0xff] %vm259_vm1, %v688_v51 }
 0x1ac   : > { %v601_v1 = vpop.f32.mrf.mxu1 }
 0x1ad   : > { %v651_v3 = vadd.f32 %v650_v52, %v601_v1  ;;  %v582_v52 = vld [vmem:[#allocation2 + $0x40] sm:$0xff] }
 0x1af   : > { %v689_v4 = vadd.f32 %v651_v3, %v575_v0 }
 0x1b0   : > { %v724_v5 = vld [vmem:[#allocation2] sm:$0xff]  ;;  %v653_v6 = vpop.f32.mrf.mxu2 }
 0x1b1   : > { %v744_v7 = vadd.f32 %v1204_v2, %v724_v5  ;;  %706 = vst.msk [vmem:[#allocation2 + $0x8] sm:$0xff] %vm259_vm1, %v689_v4 }
 0x1b3   : > { %v760_v8 = vmax.f32 %v744_v7, 0.0 }
 0x1b4   : > { %v604_v10 = vpop.f32.mrf.mxu1 }
 0x1b5   : > { %v776_v11 = vpack.c.bf16 %v760_v8, %v760_v8  ;;  %v654_v12 = vadd.f32 %v653_v6, %v604_v10 }
 0x1b7   : > { %793 = vst.msk [vmem:[%s1211_s29] sm:$0xf] %vm792_vm2, %v776_v11  ;;  %v690_v13 = vadd.f32 %v654_v12, %v576_v9  ;;  %v583_v9 = vld [vmem:[#allocation2 + $0x48] sm:$0xff] }
 0x1b8   : > { %v725_v14 = vld [vmem:[#allocation2 + $0x8] sm:$0xff]  ;;  %v655_v15 = vpop.f32.mrf.mxu2 }
 0x1b9   : > { %v745_v16 = vadd.f32 %v1204_v2, %v725_v14  ;;  %707 = vst.msk [vmem:[#allocation2 + $0x10] sm:$0xff] %vm259_vm1, %v690_v13 }
 0x1bb   : > { %v761_v17 = vmax.f32 %v745_v16, 0.0 }
 0x1bc   : > { %v606_v19 = vpop.f32.mrf.mxu1 }
 0x1bd   : > { %v777_v20 = vpack.c.bf16 %v761_v17, %v761_v17  ;;  %v656_v21 = vadd.f32 %v655_v15, %v606_v19 }
 0x1bf   : > { %794 = vst.msk [vmem:[%s1211_s29 + $0x4] sm:$0xf] %vm792_vm2, %v777_v20  ;;  %v691_v22 = vadd.f32 %v656_v21, %v577_v18  ;;  %v584_v18 = vld [vmem:[#allocation2 + $0x50] sm:$0xff] }
 0x1c0   : > { %v726_v23 = vld [vmem:[#allocation2 + $0x10] sm:$0xff]  ;;  %v658_v24 = vpop.f32.mrf.mxu2 }
 0x1c1   : > { %v746_v25 = vadd.f32 %v1204_v2, %v726_v23  ;;  %708 = vst.msk [vmem:[#allocation2 + $0x18] sm:$0xff] %vm259_vm1, %v691_v22 }
 0x1c3   : > { %v762_v26 = vmax.f32 %v746_v25, 0.0 }
 0x1c4   : > { %v609_v28 = vpop.f32.mrf.mxu1 }
 0x1c5   : > { %v778_v29 = vpack.c.bf16 %v762_v26, %v762_v26  ;;  %v659_v30 = vadd.f32 %v658_v24, %v609_v28 }
 0x1c7   : > { %795 = vst.msk [vmem:[%s1211_s29 + $0x8] sm:$0xf] %vm792_vm2, %v778_v29  ;;  %v692_v31 = vadd.f32 %v659_v30, %v578_v27  ;;  %v585_v27 = vld [vmem:[#allocation2 + $0x58] sm:$0xff] }
 0x1c8   : > { %v727_v32 = vld [vmem:[#allocation2 + $0x18] sm:$0xff]  ;;  %v660_v33 = vpop.f32.mrf.mxu2 }
 0x1c9   : > { %v747_v34 = vadd.f32 %v1204_v2, %v727_v32  ;;  %709 = vst.msk [vmem:[#allocation2 + $0x20] sm:$0xff] %vm259_vm1, %v692_v31 }
 0x1cb   : > { %v763_v35 = vmax.f32 %v747_v34, 0.0 }
 0x1cc   : > { %v611_v37 = vpop.f32.mrf.mxu1 }
 0x1cd   : > { %v779_v38 = vpack.c.bf16 %v763_v35, %v763_v35  ;;  %v661_v39 = vadd.f32 %v660_v33, %v611_v37 }
 0x1cf   : > { %796 = vst.msk [vmem:[%s1211_s29 + $0xc] sm:$0xf] %vm792_vm2, %v779_v38  ;;  %v693_v40 = vadd.f32 %v661_v39, %v579_v36  ;;  %v586_v36 = vld [vmem:[#allocation2 + $0x60] sm:$0xff] }
 0x1d0   : > { %v728_v41 = vld [vmem:[#allocation2 + $0x20] sm:$0xff]  ;;  %v663_v42 = vpop.f32.mrf.mxu2 }
 0x1d1   : > { %v748_v43 = vadd.f32 %v1204_v2, %v728_v41  ;;  %710 = vst.msk [vmem:[#allocation2 + $0x28] sm:$0xff] %vm259_vm1, %v693_v40 }
 0x1d3   : > { %v764_v44 = vmax.f32 %v748_v43, 0.0 }
 0x1d4   : > { %v614_v46 = vpop.f32.mrf.mxu1 }
 0x1d5   : > { %v780_v47 = vpack.c.bf16 %v764_v44, %v764_v44  ;;  %v664_v48 = vadd.f32 %v663_v42, %v614_v46 }
 0x1d7   : > { %797 = vst.msk [vmem:[%s1211_s29 + $0x10] sm:$0xf] %vm792_vm2, %v780_v47  ;;  %v694_v50 = vadd.f32 %v664_v48, %v580_v45  ;;  %v587_v45 = vld [vmem:[#allocation2 + $0x68] sm:$0xff] }
 0x1d8   : > { %v729_v53 = vld [vmem:[#allocation2 + $0x28] sm:$0xff]  ;;  %v665_v54 = vpop.f32.mrf.mxu2 }
 0x1d9   : > { %v749_v56 = vadd.f32 %v1204_v2, %v729_v53  ;;  %711 = vst.msk [vmem:[#allocation2 + $0x30] sm:$0xff] %vm259_vm1, %v694_v50 }
 0x1db   : > { %v765_v59 = vmax.f32 %v749_v56, 0.0 }
 0x1dc   : > { %v616_v55 = vpop.f32.mrf.mxu1 }
 0x1dd   : > { %v781_v57 = vpack.c.bf16 %v765_v59, %v765_v59  ;;  %v666_v58 = vadd.f32 %v665_v54, %v616_v55 }
 0x1df   : > { %798 = vst.msk [vmem:[%s1211_s29 + $0x14] sm:$0xf] %vm792_vm2, %v781_v57  ;;  %v695_v61 = vadd.f32 %v666_v58, %v581_v60  ;;  %v588_v60 = vld [vmem:[#allocation2 + $0x70] sm:$0xff] }
 0x1e0   : > { %v730_v62 = vld [vmem:[#allocation2 + $0x30] sm:$0xff]  ;;  %v668_v63 = vpop.f32.mrf.mxu2 }
 0x1e1   : > { %v750_v49 = vadd.f32 %v1204_v2, %v730_v62  ;;  %712 = vst.msk [vmem:[#allocation2 + $0x38] sm:$0xff] %vm259_vm1, %v695_v61 }
 0x1e3   : > { %v766_v51 = vmax.f32 %v750_v49, 0.0 }
 0x1e4   : > { %v619_v0 = vpop.f32.mrf.mxu1 }
 0x1e5   : > { %v782_v1 = vpack.c.bf16 %v766_v51, %v766_v51  ;;  %v669_v3 = vadd.f32 %v668_v63, %v619_v0 }
 0x1e7   : > { %799 = vst.msk [vmem:[%s1211_s29 + $0x18] sm:$0xf] %vm792_vm2, %v782_v1  ;;  %v696_v4 = vadd.f32 %v669_v3, %v582_v52  ;;  %v589_v52 = vld [vmem:[#allocation2 + $0x78] sm:$0xff] }
 0x1e8   : > { %v731_v5 = vld [vmem:[#allocation2 + $0x38] sm:$0xff]  ;;  %v670_v6 = vpop.f32.mrf.mxu2 }
 0x1e9   : > { %v751_v7 = vadd.f32 %v1204_v2, %v731_v5  ;;  %713 = vst.msk [vmem:[#allocation2 + $0x40] sm:$0xff] %vm259_vm1, %v696_v4 }
 0x1eb   : > { %v767_v8 = vmax.f32 %v751_v7, 0.0 }
 0x1ec   : > { %v621_v10 = vpop.f32.mrf.mxu1 }
 0x1ed   : > { %v783_v11 = vpack.c.bf16 %v767_v8, %v767_v8  ;;  %v671_v12 = vadd.f32 %v670_v6, %v621_v10 }
 0x1ef   : > { %800 = vst.msk [vmem:[%s1211_s29 + $0x1c] sm:$0xf] %vm792_vm2, %v783_v11  ;;  %v697_v13 = vadd.f32 %v671_v12, %v583_v9 }
 0x1f0   : > { %v732_v14 = vld [vmem:[#allocation2 + $0x40] sm:$0xff]  ;;  %v673_v15 = vpop.f32.mrf.mxu2 }
 0x1f1   : > { %v752_v16 = vadd.f32 %v1204_v2, %v732_v14  ;;  %714 = vst.msk [vmem:[#allocation2 + $0x48] sm:$0xff] %vm259_vm1, %v697_v13 }
 0x1f3   : > { %v768_v17 = vmax.f32 %v752_v16, 0.0 }
 0x1f4   : > { %v624_v19 = vpop.f32.mrf.mxu1 }
 0x1f5   : > { %v784_v20 = vpack.c.bf16 %v768_v17, %v768_v17  ;;  %v674_v21 = vadd.f32 %v673_v15, %v624_v19 }
 0x1f7   : > { %801 = vst.msk [vmem:[%s1211_s29 + $0x20] sm:$0xf] %vm792_vm2, %v784_v20  ;;  %v698_v22 = vadd.f32 %v674_v21, %v584_v18 }
 0x1f8   : > { %v733_v23 = vld [vmem:[#allocation2 + $0x48] sm:$0xff]  ;;  %v675_v24 = vpop.f32.mrf.mxu2 }
 0x1f9   : > { %v753_v25 = vadd.f32 %v1204_v2, %v733_v23  ;;  %715 = vst.msk [vmem:[#allocation2 + $0x50] sm:$0xff] %vm259_vm1, %v698_v22 }
 0x1fb   : > { %v769_v26 = vmax.f32 %v753_v25, 0.0 }
 0x1fc   : > { %v626_v28 = vpop.f32.mrf.mxu1 }
 0x1fd   : > { %v785_v29 = vpack.c.bf16 %v769_v26, %v769_v26  ;;  %v676_v30 = vadd.f32 %v675_v24, %v626_v28 }
 0x1ff   : > { %802 = vst.msk [vmem:[%s1211_s29 + $0x24] sm:$0xf] %vm792_vm2, %v785_v29  ;;  %v699_v31 = vadd.f32 %v676_v30, %v585_v27 }
 0x200   : > { %v734_v32 = vld [vmem:[#allocation2 + $0x50] sm:$0xff]  ;;  %v678_v33 = vpop.f32.mrf.mxu2 }
 0x201   : > { %v754_v34 = vadd.f32 %v1204_v2, %v734_v32  ;;  %716 = vst.msk [vmem:[#allocation2 + $0x58] sm:$0xff] %vm259_vm1, %v699_v31 }
 0x203   : > { %v770_v35 = vmax.f32 %v754_v34, 0.0 }
 0x204   : > { %v629_v37 = vpop.f32.mrf.mxu1 }
 0x205   : > { %v786_v38 = vpack.c.bf16 %v770_v35, %v770_v35  ;;  %v679_v39 = vadd.f32 %v678_v33, %v629_v37 }
 0x207   : > { %803 = vst.msk [vmem:[%s1211_s29 + $0x28] sm:$0xf] %vm792_vm2, %v786_v38  ;;  %v700_v40 = vadd.f32 %v679_v39, %v586_v36 }
 0x208   : > { %v735_v41 = vld [vmem:[#allocation2 + $0x58] sm:$0xff]  ;;  %v680_v42 = vpop.f32.mrf.mxu2 }
 0x209   : > { %v755_v43 = vadd.f32 %v1204_v2, %v735_v41  ;;  %717 = vst.msk [vmem:[#allocation2 + $0x60] sm:$0xff] %vm259_vm1, %v700_v40 }
 0x20b   : > { %v771_v44 = vmax.f32 %v755_v43, 0.0 }
 0x20c   : > { %v631_v46 = vpop.f32.mrf.mxu1 }
 0x20d   : > { %v787_v47 = vpack.c.bf16 %v771_v44, %v771_v44  ;;  %v681_v48 = vadd.f32 %v680_v42, %v631_v46 }
 0x20f   : > { %804 = vst.msk [vmem:[%s1211_s29 + $0x2c] sm:$0xf] %vm792_vm2, %v787_v47  ;;  %v701_v50 = vadd.f32 %v681_v48, %v587_v45 }
 0x210   : > { %v736_v53 = vld [vmem:[#allocation2 + $0x60] sm:$0xff]  ;;  %v683_v56 = vpop.f32.mrf.mxu2 }
 0x211   : > { %v756_v54 = vadd.f32 %v1204_v2, %v736_v53  ;;  %718 = vst.msk [vmem:[#allocation2 + $0x68] sm:$0xff] %vm259_vm1, %v701_v50 }
 0x213   : > { %v772_v59 = vmax.f32 %v756_v54, 0.0 }
 0x214   : > { %v634_v55 = vpop.f32.mrf.mxu1 }
 0x215   : > { %v788_v57 = vpack.c.bf16 %v772_v59, %v772_v59  ;;  %v684_v58 = vadd.f32 %v683_v56, %v634_v55 }
 0x217   : > { %805 = vst.msk [vmem:[%s1211_s29 + $0x30] sm:$0xf] %vm792_vm2, %v788_v57  ;;  %v702_v61 = vadd.f32 %v684_v58, %v588_v60 }
 0x218   : > { %v737_v62 = vld [vmem:[#allocation2 + $0x68] sm:$0xff]  ;;  %v685_v51 = vpop.f32.mrf.mxu2 }
 0x219   : > { %v757_v63 = vadd.f32 %v1204_v2, %v737_v62  ;;  %719 = vst.msk [vmem:[#allocation2 + $0x70] sm:$0xff] %vm259_vm1, %v702_v61 }
 0x21b   : > { %v773_v49 = vmax.f32 %v757_v63, 0.0 }
 0x21c   : > { %v636_v0 = vpop.f32.mrf.mxu1 }
 0x21d   : > { %v789_v1 = vpack.c.bf16 %v773_v49, %v773_v49  ;;  %v686_v3 = vadd.f32 %v685_v51, %v636_v0 }
 0x21f   : > { %806 = vst.msk [vmem:[%s1211_s29 + $0x34] sm:$0xf] %vm792_vm2, %v789_v1  ;;  %v703_v4 = vadd.f32 %v686_v3, %v589_v52 }
 0x220   : > { %v738_v5 = vld [vmem:[#allocation2 + $0x70] sm:$0xff] }
 0x221   : > { %v758_v6 = vadd.f32 %v1204_v2, %v738_v5  ;;  %720 = vst.msk [vmem:[#allocation2 + $0x78] sm:$0xff] %vm259_vm1, %v703_v4 }
 0x223   : > { %v774_v7 = vmax.f32 %v758_v6, 0.0 }
 0x225   : > { %v790_v8 = vpack.c.bf16 %v774_v7, %v774_v7 }
 0x227   : > { %807 = vst.msk [vmem:[%s1211_s29 + $0x38] sm:$0xf] %vm792_vm2, %v790_v8 }
 0x228   : > { %v739_v9 = vld [vmem:[#allocation2 + $0x78] sm:$0xff] }
 0x229   : > { %v759_v10 = vadd.f32 %v1204_v2, %v739_v9 }
 0x22b   : > { %v775_v11 = vmax.f32 %v759_v10, 0.0 }
 0x22d   : > { %v791_v12 = vpack.c.bf16 %v775_v11, %v775_v11 }
 0x22f   : > { %808 = vst.msk [vmem:[%s1211_s29 + $0x3c] sm:$0xf] %vm792_vm2, %v791_v12 }
 0x230 PF: > { %s14_s17 = sadd.s32 1, %s979_s17   ;;  %s1288_s15 = smov %s975_s16 }
 0x231   : > { %p11_p6 = scmp.ge.s32.totalorder %s14_s17, 4   ;;  %s1289_s16 = smov %s1291_s18 }
 0x233   :  { %13 = sbr.rel (!%p11_p6) target bundleno = 2 (0x2), region = 77 }

</bundles_post_ra>
